<compile_context>
chip_gen: v6e
topology: v6e:2x2x1
jax: 0.10.0
libtpu: 0.0.40
codegen_flags: <defaults>
</compile_context>

<pallas_src>
import functools

import jax
import jax.numpy as jnp
from jax.experimental import pallas as pl
from jax.experimental.pallas import tpu as pltpu


def _round_up(x, m):
    return (x + m - 1) // m * m


def _bspec(shape, index_map, *, buffer_count=None, use_buffered=True):
    """BlockSpec helper: optionally request a non-default buffer count, falling back to
    a plain BlockSpec if pipeline_mode / pl.Buffered is unavailable in this build."""
    if buffer_count is not None and use_buffered:
        try:
            return pl.BlockSpec(shape, index_map,
                                pipeline_mode=pl.Buffered(buffer_count))
        except Exception:
            pass
    return pl.BlockSpec(shape, index_map)


def _siamese_kernel(x_ref, w1_ref, b1_ref, w2_ref, b2_ref, out_ref, acc_ref,
                    *, emb_dim):
    """Grid = (batch tiles, D-reduction tiles).  Layer-1 accumulates over D; layer-2,
    the two pairwise distances and the store happen on the last D tile."""
    k = pl.program_id(1)

    @pl.when(k == 0)
    def _init():
        acc_ref[...] = jnp.zeros_like(acc_ref)

    # x_ref: (3, TB, tk) bf16.  Merge the leading (3, TB) dims (layout-free: TB is a
    # multiple of 8 sublanes), so layer 1 is a single MXU matmul per grid step.
    g, tb, tk = x_ref.shape
    x2d = x_ref[...].reshape(g * tb, tk)
    acc_ref[...] += jnp.dot(x2d, w1_ref[...], preferred_element_type=jnp.float32)

    @pl.when(k == pl.num_programs(1) - 1)
    def _finalize():
        h = jnp.maximum(acc_ref[...] + b1_ref[...], 0.0)           # Linear1 + ReLU (f32)
        # Layer 2 on bf16 MXU inputs, f32 accumulation.
        z = jnp.dot(h.astype(jnp.bfloat16), w2_ref[...],
                    preferred_element_type=jnp.float32) + b2_ref[...]
        z1 = z[0:tb]
        z2 = z[tb:2 * tb]
        z3 = z[2 * tb:3 * tb]
        # eps only on real embedding lanes -> zero-padded lanes contribute exactly 0.
        lane = jax.lax.broadcasted_iota(jnp.int32, (1, z.shape[-1]), 1)
        eps = jnp.where(lane < emb_dim, jnp.float32(1e-6), jnp.float32(0.0))
        dap = jnp.sqrt(jnp.sum((z1 - z2 + eps) ** 2, axis=-1, keepdims=True))
        dan = jnp.sqrt(jnp.sum((z1 - z3 + eps) ** 2, axis=-1, keepdims=True))
        out_ref[...] = jnp.broadcast_to(dap - dan, out_ref.shape)   # lane-dense store


def _plan(B, D, HID, E):
    """Tiling plan derived from the actual chip's VMEM capacity."""
    HID_pad = _round_up(HID, 128)
    E_pad = _round_up(E, 128)
    D128 = _round_up(D, 128)

    try:
        vmem_cap = int(pltpu.get_tpu_info().vmem_capacity_bytes)
    except Exception:
        vmem_cap = 64 * 1024 * 1024          # conservative default (v7x per-core VMEM)
    budget = int(vmem_cap * 0.6)             # headroom for compiler-internal scratch

    # Batch tile: up to 256 rows, but keep >= 2 batch tiles when possible so the
    # "parallel" grid axis can shard across both TensorCores on v7x.
    B8 = _round_up(B, 8)
    TB = min(256, B8)
    if B8 >= 16 and B8 // TB <= 1:
        TB = _round_up((B8 + 1) // 2, 8)
    B_pad = _round_up(B, TB)
    nb = B_pad // TB

    # Fixed (K-independent) VMEM: resident w2 (bf16) + biases + f32 accumulator + out.
    fixed = (HID_pad * E_pad * 2 + HID_pad * 4 + E_pad * 4
             + 3 * TB * HID_pad * 4 + 2 * TB * 128 * 4)

    def vmem_need(tk, nk):
        x_buf = 2 * (3 * TB * tk * 2)                        # double-buffered bf16 x tile
        w1_buf = (1 if nk == 1 else 2) * tk * HID_pad * 2    # bf16 w1 tile(s)
        return fixed + x_buf + w1_buf

    # Prefer a single K block (w1 fully resident => DMA'd exactly once); otherwise the
    # largest K tile (multiple of 128, capped at 2048) that fits the budget.
    if vmem_need(D128, 1) <= budget:
        tk = D128
    else:
        per_k = 2 * 3 * TB * 2 + 2 * HID_pad * 2
        tk = max(128, min(2048, ((budget - fixed) // per_k) // 128 * 128))
        tk = min(tk, D128)
    D_pad = _round_up(D, tk)
    nk = D_pad // tk

    vmem_limit = min(vmem_cap, max(int(vmem_need(tk, nk) * 1.5), 32 * 1024 * 1024))
    return TB, B_pad, nb, tk, D_pad, nk, HID_pad, E_pad, vmem_limit


def siamese_forward(x, w1, b1, w2, b2, *, use_buffered=True):
    """x: (3, B, C, H, W) -> (B,) float32 (dap - dan)."""
    assert x.shape[0] == 3
    B = x.shape[1]
    D = 1
    for s in x.shape[2:]:
        D *= s
    HID = w1.shape[1]
    E = w2.shape[1]

    TB, B_pad, nb, tk, D_pad, nk, HID_pad, E_pad, vmem_limit = _plan(B, D, HID, E)

    # ---- operand prep: flatten, cast straight to bf16, zero-pad (no transposes) ----
    xp = jnp.pad(x.reshape(3, B, D).astype(jnp.bfloat16),
                 ((0, 0), (0, B_pad - B), (0, D_pad - D)))           # (3, B_pad, D_pad)
    w1p = jnp.pad(w1.astype(jnp.bfloat16),
                  ((0, D_pad - D), (0, HID_pad - HID)))              # bf16, K-tiled
    b1p = jnp.pad(b1.astype(jnp.float32), (0, HID_pad - HID)).reshape(1, HID_pad)
    w2p = jnp.pad(w2.astype(jnp.bfloat16),
                  ((0, HID_pad - HID), (0, E_pad - E)))              # bf16, resident
    b2p = jnp.pad(b2.astype(jnp.float32), (0, E_pad - E)).reshape(1, E_pad)

    cost = pl.CostEstimate(
        flops=2 * 3 * B_pad * D_pad * HID_pad + 2 * 3 * B_pad * HID_pad * E_pad,
        transcendentals=2 * B_pad,
        bytes_accessed=(xp.size * 2 + (1 if nk == 1 else nb) * w1p.size * 2
                        + w2p.size * 2 + b1p.size * 4 + b2p.size * 4
                        + B_pad * 128 * 4),
    )

    in_specs = [
        # x in its natural (3, B_pad, D_pad) layout -- no host-side interleave pass.
        _bspec((3, TB, tk), lambda i, k: (0, i, k)),
        # w1: when nk == 1 its block index is constant -> fetched once, single buffer.
        _bspec((tk, HID_pad), lambda i, k: (k, 0),
               buffer_count=1 if nk == 1 else None, use_buffered=use_buffered),
        _bspec((1, HID_pad), lambda i, k: (0, 0),
               buffer_count=1, use_buffered=use_buffered),
        _bspec((HID_pad, E_pad), lambda i, k: (0, 0),
               buffer_count=1, use_buffered=use_buffered),
        _bspec((1, E_pad), lambda i, k: (0, 0),
               buffer_count=1, use_buffered=use_buffered),
    ]

    out = pl.pallas_call(
        functools.partial(_siamese_kernel, emb_dim=E),
        out_shape=jax.ShapeDtypeStruct((B_pad, 128), jnp.float32),
        grid_spec=pltpu.PrefetchScalarGridSpec(
            num_scalar_prefetch=0,
            grid=(nb, nk),
            in_specs=in_specs,
            out_specs=pl.BlockSpec((TB, 128), lambda i, k: (i, 0)),
            scratch_shapes=[pltpu.VMEM((3 * TB, HID_pad), jnp.float32)],
        ),
        compiler_params=pltpu.CompilerParams(
            dimension_semantics=("parallel", "arbitrary"),
            vmem_limit_bytes=vmem_limit),
        cost_estimate=cost,
    )(xp, w1p, b1p, w2p, b2p)

    return out[:B, 0]


def _reference(x, w1, b1, w2, b2, *, match_kernel_precision=False):
    """Pure-JAX reference reproducing the PyTorch semantics (f32); optionally applies
    the kernel's bf16 rounding of both MXU input pairs (layer 1 and layer 2)."""
    xf = x.reshape(3, x.shape[1], -1).astype(jnp.float32)
    w1f = w1.astype(jnp.float32)
    w2f = w2.astype(jnp.float32)
    if match_kernel_precision:
        xf = xf.astype(jnp.bfloat16).astype(jnp.float32)
        w1f = w1f.astype(jnp.bfloat16).astype(jnp.float32)
        w2f = w2f.astype(jnp.bfloat16).astype(jnp.float32)

    def enc(v):
        h = jnp.maximum(
            jnp.dot(v, w1f, precision=jax.lax.Precision.HIGHEST) + b1, 0.0)
        if match_kernel_precision:
            h = h.astype(jnp.bfloat16).astype(jnp.float32)
        return jnp.dot(h, w2f, precision=jax.lax.Precision.HIGHEST) + b2

    z1, z2, z3 = enc(xf[0]), enc(xf[1]), enc(xf[2])
    eps = 1e-6
    dap = jnp.sqrt(jnp.sum((z1 - z2 + eps) ** 2, axis=-1))
    dan = jnp.sqrt(jnp.sum((z1 - z3 + eps) ** 2, axis=-1))
    return dap - dan


if __name__ == "__main__":
    # Small shapes consistent with the module: a triplet of NCHW images.
    B, C, H, W = 2, 4, 16, 16
    D = C * H * W          # 1024 flattened features
    HID = 128              # encoder hidden width
    E = 32                 # embedding dim

    key = jax.random.PRNGKey(0)
    kx, kw1, kb1, kw2, kb2 = jax.random.split(key, 5)

    x = jax.random.normal(kx, (3, B, C, H, W), dtype=jnp.float32)
    w1 = jax.random.normal(kw1, (D, HID), dtype=jnp.float32) * 0.02
    b1 = jax.random.normal(kb1, (HID,), dtype=jnp.float32) * 0.01
    w2 = jax.random.normal(kw2, (HID, E), dtype=jnp.float32) * 0.05
    b2 = jax.random.normal(kb2, (E,), dtype=jnp.float32) * 0.01

    try:
        fwd = jax.jit(functools.partial(siamese_forward, use_buffered=True))
        out = jax.block_until_ready(fwd(x, w1, b1, w2, b2))
    except Exception:
        # Fallback if pipeline_mode=pl.Buffered(1) isn't supported by this jax build.
        fwd = jax.jit(functools.partial(siamese_forward, use_buffered=False))
        out = jax.block_until_ready(fwd(x, w1, b1, w2, b2))

    assert out.shape == (B,), out.shape

    # Tight check: reference with identical bf16 rounding of both MXU input pairs.
    ref_matched = _reference(x, w1, b1, w2, b2, match_kernel_precision=True)
    assert jnp.allclose(out, ref_matched, rtol=2e-3, atol=2e-3), (out, ref_matched)

    # Sanity check vs the full-f32 PyTorch-semantics reference (bf16 MXU inputs add
    # a few tenths of a percent of rounding per matmul).
    ref_f32 = _reference(x, w1, b1, w2, b2, match_kernel_precision=False)
    assert jnp.allclose(out, ref_f32, rtol=5e-2, atol=8e-2), (out, ref_f32)

    print("KERNEL_OK")
</pallas_src>

<mosaic_0001>
module attributes {stable_mosaic.version = 11 : i64} {
  func.func @_siamese_kernel(%arg0: i32, %arg1: i32, %arg2: memref<3x8x1024xbf16, #tpu.memory_space<vmem>>, %arg3: memref<1024x128xbf16, #tpu.memory_space<vmem>>, %arg4: memref<1x128xf32, #tpu.memory_space<vmem>>, %arg5: memref<128x128xbf16, #tpu.memory_space<vmem>>, %arg6: memref<1x128xf32, #tpu.memory_space<vmem>>, %arg7: memref<8x128xf32, #tpu.memory_space<vmem>>, %arg8: memref<24x128xf32, #tpu.memory_space<vmem>>) attributes {dimension_semantics = [#tpu.dimension_semantics<parallel>, #tpu.dimension_semantics<arbitrary>], iteration_bounds = array<i64: 1, 1>, scalar_prefetch = 0 : i64, scratch_operands = 1 : i64, tpu.core_type = #tpu.core_type<tc>, window_params = [{transform_indices = @transform_0, window_bounds = array<i64: 3, 8, 1024>}, {pipeline_mode = #tpu.pipeline_mode<synchronous>, transform_indices = @transform_1, window_bounds = array<i64: 1024, 128>}, {pipeline_mode = #tpu.pipeline_mode<synchronous>, transform_indices = @transform_2, window_bounds = array<i64: 1, 128>}, {pipeline_mode = #tpu.pipeline_mode<synchronous>, transform_indices = @transform_3, window_bounds = array<i64: 128, 128>}, {pipeline_mode = #tpu.pipeline_mode<synchronous>, transform_indices = @transform_4, window_bounds = array<i64: 1, 128>}, {transform_indices = @transform_5, window_bounds = array<i64: 8, 128>}]} {
    %c0_i32 = arith.constant 0 : i32
    %0 = arith.cmpi eq, %arg1, %c0_i32 : i32
    %1 = arith.extui %0 : i1 to i32
    %c0_i32_0 = arith.constant 0 : i32
    %2 = arith.cmpi ne, %1, %c0_i32_0 : i32
    scf.if %2 {
      %cst_11 = arith.constant 0.000000e+00 : f32
      %13 = vector.broadcast %cst_11 : f32 to vector<24x128xf32>
      %c0_12 = arith.constant 0 : index
      %c0_13 = arith.constant 0 : index
      %14 = vector.load %arg8[%c0_12, %c0_13] : memref<24x128xf32, #tpu.memory_space<vmem>>, vector<24x128xf32>
      tpu.vector_store %arg8[%c0_12, %c0_13], %13 {strides = array<i32>} : memref<24x128xf32, #tpu.memory_space<vmem>>, vector<24x128xf32>,
    } else {
    }
    %c0 = arith.constant 0 : index
    %c0_1 = arith.constant 0 : index
    %c0_2 = arith.constant 0 : index
    %3 = vector.load %arg2[%c0, %c0_1, %c0_2] : memref<3x8x1024xbf16, #tpu.memory_space<vmem>>, vector<3x8x1024xbf16>
    %4 = vector.shape_cast %3 : vector<3x8x1024xbf16> to vector<24x1024xbf16>
    %c0_3 = arith.constant 0 : index
    %c0_4 = arith.constant 0 : index
    %5 = vector.load %arg8[%c0_3, %c0_4] : memref<24x128xf32, #tpu.memory_space<vmem>>, vector<24x128xf32>
    %c0_5 = arith.constant 0 : index
    %c0_6 = arith.constant 0 : index
    %6 = vector.load %arg3[%c0_5, %c0_6] : memref<1024x128xbf16, #tpu.memory_space<vmem>>, vector<1024x128xbf16>
    %cst = arith.constant dense<0.000000e+00> : vector<24x128xf32>
    %7 = tpu.matmul %4, %6, %cst {dimension_numbers = #tpu.dot_dimension_numbers<[1], [0], [0], [1], [0, 0, 1, 1], [], []>} : vector<24x1024xbf16>, vector<1024x128xbf16>, vector<24x128xf32> -> vector<24x128xf32>
    %8 = arith.addf %5, %7 : vector<24x128xf32>
    %c0_7 = arith.constant 0 : index
    %c0_8 = arith.constant 0 : index
    %9 = vector.load %arg8[%c0_7, %c0_8] : memref<24x128xf32, #tpu.memory_space<vmem>>, vector<24x128xf32>
    tpu.vector_store %arg8[%c0_7, %c0_8], %8 {strides = array<i32>} : memref<24x128xf32, #tpu.memory_space<vmem>>, vector<24x128xf32>,
    %c0_i32_9 = arith.constant 0 : i32
    %10 = arith.cmpi eq, %arg1, %c0_i32_9 : i32
    %11 = arith.extui %10 : i1 to i32
    %c0_i32_10 = arith.constant 0 : i32
    %12 = arith.cmpi ne, %11, %c0_i32_10 : i32
    scf.if %12 {
      %c0_11 = arith.constant 0 : index
      %c0_12 = arith.constant 0 : index
      %13 = vector.load %arg8[%c0_11, %c0_12] : memref<24x128xf32, #tpu.memory_space<vmem>>, vector<24x128xf32>
      %c0_13 = arith.constant 0 : index
      %c0_14 = arith.constant 0 : index
      %14 = vector.load %arg4[%c0_13, %c0_14] : memref<1x128xf32, #tpu.memory_space<vmem>>, vector<1x128xf32>
      %15 = vector.broadcast %14 : vector<1x128xf32> to vector<24x128xf32>
      %16 = arith.addf %13, %15 : vector<24x128xf32>
      %cst_15 = arith.constant 0.000000e+00 : f32
      %17 = vector.broadcast %cst_15 : f32 to vector<24x128xf32>
      %18 = arith.maximumf %16, %17 : vector<24x128xf32>
      %19 = arith.truncf %18 : vector<24x128xf32> to vector<24x128xbf16>
      %c0_16 = arith.constant 0 : index
      %c0_17 = arith.constant 0 : index
      %20 = vector.load %arg5[%c0_16, %c0_17] : memref<128x128xbf16, #tpu.memory_space<vmem>>, vector<128x128xbf16>
      %cst_18 = arith.constant dense<0.000000e+00> : vector<24x128xf32>
      %21 = tpu.matmul %19, %20, %cst_18 {dimension_numbers = #tpu.dot_dimension_numbers<[1], [0], [0], [1], [0, 0, 1, 1], [], []>} : vector<24x128xbf16>, vector<128x128xbf16>, vector<24x128xf32> -> vector<24x128xf32>
      %c0_19 = arith.constant 0 : index
      %c0_20 = arith.constant 0 : index
      %22 = vector.load %arg6[%c0_19, %c0_20] : memref<1x128xf32, #tpu.memory_space<vmem>>, vector<1x128xf32>
      %23 = vector.broadcast %22 : vector<1x128xf32> to vector<24x128xf32>
      %24 = arith.addf %21, %23 : vector<24x128xf32>
      %25 = vector.extract_strided_slice %24 {offsets = [0, 0], sizes = [8, 128], strides = [1, 1]} : vector<24x128xf32> to vector<8x128xf32>
      %26 = vector.extract_strided_slice %24 {offsets = [8, 0], sizes = [8, 128], strides = [1, 1]} : vector<24x128xf32> to vector<8x128xf32>
      %27 = vector.extract_strided_slice %24 {offsets = [16, 0], sizes = [8, 128], strides = [1, 1]} : vector<24x128xf32> to vector<8x128xf32>
      %28 = tpu.iota {dimensions = array<i32: 1>} : vector<1x128xi32>
      %c32_i32 = arith.constant 32 : i32
      %29 = vector.broadcast %c32_i32 : i32 to vector<1x128xi32>
      %30 = arith.cmpi slt, %28, %29 : vector<1x128xi32>
      %cst_21 = arith.constant 9.99999997E-7 : f32
      %cst_22 = arith.constant 0.000000e+00 : f32
      %31 = vector.broadcast %cst_21 : f32 to vector<1x128xf32>
      %32 = vector.broadcast %cst_22 : f32 to vector<1x128xf32>
      %33 = arith.select %30, %31, %32 : vector<1x128xi1>, vector<1x128xf32>
      %34 = arith.subf %25, %26 : vector<8x128xf32>
      %35 = vector.broadcast %33 : vector<1x128xf32> to vector<8x128xf32>
      %36 = arith.addf %34, %35 : vector<8x128xf32>
      %37 = arith.mulf %36, %36 : vector<8x128xf32>
      %cst_23 = arith.constant dense<0.000000e+00> : vector<8xf32>
      %38 = vector.multi_reduction <add>, %37, %cst_23 [1] : vector<8x128xf32> to vector<8xf32>
      %39 = vector.shape_cast %38 : vector<8xf32> to vector<8x1xf32>
      %40 = math.sqrt %39 : vector<8x1xf32>
      %41 = arith.subf %25, %27 : vector<8x128xf32>
      %42 = vector.broadcast %33 : vector<1x128xf32> to vector<8x128xf32>
      %43 = arith.addf %41, %42 : vector<8x128xf32>
      %44 = arith.mulf %43, %43 : vector<8x128xf32>
      %cst_24 = arith.constant dense<0.000000e+00> : vector<8xf32>
      %45 = vector.multi_reduction <add>, %44, %cst_24 [1] : vector<8x128xf32> to vector<8xf32>
      %46 = vector.shape_cast %45 : vector<8xf32> to vector<8x1xf32>
      %47 = math.sqrt %46 : vector<8x1xf32>
      %48 = arith.subf %40, %47 : vector<8x1xf32>
      %49 = vector.shape_cast %48 : vector<8x1xf32> to vector<8x1xf32>
      %50 = vector.broadcast %49 : vector<8x1xf32> to vector<8x128xf32>
      %c0_25 = arith.constant 0 : index
      %c0_26 = arith.constant 0 : index
      %51 = vector.load %arg7[%c0_25, %c0_26] : memref<8x128xf32, #tpu.memory_space<vmem>>, vector<8x128xf32>
      tpu.vector_store %arg7[%c0_25, %c0_26], %50 {strides = array<i32>} : memref<8x128xf32, #tpu.memory_space<vmem>>, vector<8x128xf32>,
    } else {
    }
    return
  }
  func.func @transform_0(%arg0: i32, %arg1: i32) -> (i32, i32, i32) {
    %c0_i32 = arith.constant 0 : i32
    %c0_i32_0 = arith.constant 0 : i32
    return %c0_i32, %arg0, %arg1 : i32, i32, i32
  }
  func.func @transform_1(%arg0: i32, %arg1: i32) -> (i32, i32) {
    %c0_i32 = arith.constant 0 : i32
    %c0_i32_0 = arith.constant 0 : i32
    return %arg1, %c0_i32 : i32, i32
  }
  func.func @transform_2(%arg0: i32, %arg1: i32) -> (i32, i32) {
    %c0_i32 = arith.constant 0 : i32
    %c0_i32_0 = arith.constant 0 : i32
    %c0_i32_1 = arith.constant 0 : i32
    return %c0_i32, %c0_i32_0 : i32, i32
  }
  func.func @transform_3(%arg0: i32, %arg1: i32) -> (i32, i32) {
    %c0_i32 = arith.constant 0 : i32
    %c0_i32_0 = arith.constant 0 : i32
    %c0_i32_1 = arith.constant 0 : i32
    return %c0_i32, %c0_i32_0 : i32, i32
  }
  func.func @transform_4(%arg0: i32, %arg1: i32) -> (i32, i32) {
    %c0_i32 = arith.constant 0 : i32
    %c0_i32_0 = arith.constant 0 : i32
    %c0_i32_1 = arith.constant 0 : i32
    return %c0_i32, %c0_i32_0 : i32, i32
  }
  func.func @transform_5(%arg0: i32, %arg1: i32) -> (i32, i32) {
    %c0_i32 = arith.constant 0 : i32
    %c0_i32_0 = arith.constant 0 : i32
    return %arg0, %c0_i32 : i32, i32
  }
}

module attributes {stable_mosaic.version = 11 : i64} {
  func.func @_siamese_kernel(%arg0: i32, %arg1: i32, %arg2: memref<3x8x1024xbf16, #tpu.memory_space<vmem>>, %arg3: memref<1024x128xbf16, #tpu.memory_space<vmem>>, %arg4: memref<1x128xf32, #tpu.memory_space<vmem>>, %arg5: memref<128x128xbf16, #tpu.memory_space<vmem>>, %arg6: memref<1x128xf32, #tpu.memory_space<vmem>>, %arg7: memref<8x128xf32, #tpu.memory_space<vmem>>, %arg8: memref<24x128xf32, #tpu.memory_space<vmem>>) attributes {dimension_semantics = [#tpu.dimension_semantics<parallel>, #tpu.dimension_semantics<arbitrary>], iteration_bounds = array<i64: 1, 1>, scalar_prefetch = 0 : i64, scratch_operands = 1 : i64, tpu.core_type = #tpu.core_type<tc>, window_params = [{transform_indices = @transform_0, window_bounds = array<i64: 3, 8, 1024>}, {transform_indices = @transform_1, window_bounds = array<i64: 1024, 128>}, {pipeline_mode = #tpu.pipeline_mode<synchronous>, transform_indices = @transform_2, window_bounds = array<i64: 1, 128>}, {pipeline_mode = #tpu.pipeline_mode<synchronous>, transform_indices = @transform_3, window_bounds = array<i64: 128, 128>}, {pipeline_mode = #tpu.pipeline_mode<synchronous>, transform_indices = @transform_4, window_bounds = array<i64: 1, 128>}, {transform_indices = @transform_5, window_bounds = array<i64: 8, 128>}]} {
    %c0_i32 = arith.constant 0 : i32
    %0 = arith.cmpi eq, %arg1, %c0_i32 : i32
    %1 = arith.extui %0 : i1 to i32
    %c0_i32_0 = arith.constant 0 : i32
    %2 = arith.cmpi ne, %1, %c0_i32_0 : i32
    scf.if %2 {
      %cst_11 = arith.constant 0.000000e+00 : f32
      %13 = vector.broadcast %cst_11 : f32 to vector<24x128xf32>
      %c0_12 = arith.constant 0 : index
      %c0_13 = arith.constant 0 : index
      %14 = vector.load %arg8[%c0_12, %c0_13] : memref<24x128xf32, #tpu.memory_space<vmem>>, vector<24x128xf32>
      tpu.vector_store %arg8[%c0_12, %c0_13], %13 {strides = array<i32>} : memref<24x128xf32, #tpu.memory_space<vmem>>, vector<24x128xf32>,
    } else {
    }
    %c0 = arith.constant 0 : index
    %c0_1 = arith.constant 0 : index
    %c0_2 = arith.constant 0 : index
    %3 = vector.load %arg2[%c0, %c0_1, %c0_2] : memref<3x8x1024xbf16, #tpu.memory_space<vmem>>, vector<3x8x1024xbf16>
    %4 = vector.shape_cast %3 : vector<3x8x1024xbf16> to vector<24x1024xbf16>
    %c0_3 = arith.constant 0 : index
    %c0_4 = arith.constant 0 : index
    %5 = vector.load %arg8[%c0_3, %c0_4] : memref<24x128xf32, #tpu.memory_space<vmem>>, vector<24x128xf32>
    %c0_5 = arith.constant 0 : index
    %c0_6 = arith.constant 0 : index
    %6 = vector.load %arg3[%c0_5, %c0_6] : memref<1024x128xbf16, #tpu.memory_space<vmem>>, vector<1024x128xbf16>
    %cst = arith.constant dense<0.000000e+00> : vector<24x128xf32>
    %7 = tpu.matmul %4, %6, %cst {dimension_numbers = #tpu.dot_dimension_numbers<[1], [0], [0], [1], [0, 0, 1, 1], [], []>} : vector<24x1024xbf16>, vector<1024x128xbf16>, vector<24x128xf32> -> vector<24x128xf32>
    %8 = arith.addf %5, %7 : vector<24x128xf32>
    %c0_7 = arith.constant 0 : index
    %c0_8 = arith.constant 0 : index
    %9 = vector.load %arg8[%c0_7, %c0_8] : memref<24x128xf32, #tpu.memory_space<vmem>>, vector<24x128xf32>
    tpu.vector_store %arg8[%c0_7, %c0_8], %8 {strides = array<i32>} : memref<24x128xf32, #tpu.memory_space<vmem>>, vector<24x128xf32>,
    %c0_i32_9 = arith.constant 0 : i32
    %10 = arith.cmpi eq, %arg1, %c0_i32_9 : i32
    %11 = arith.extui %10 : i1 to i32
    %c0_i32_10 = arith.constant 0 : i32
    %12 = arith.cmpi ne, %11, %c0_i32_10 : i32
    scf.if %12 {
      %c0_11 = arith.constant 0 : index
      %c0_12 = arith.constant 0 : index
      %13 = vector.load %arg8[%c0_11, %c0_12] : memref<24x128xf32, #tpu.memory_space<vmem>>, vector<24x128xf32>
      %c0_13 = arith.constant 0 : index
      %c0_14 = arith.constant 0 : index
      %14 = vector.load %arg4[%c0_13, %c0_14] : memref<1x128xf32, #tpu.memory_space<vmem>>, vector<1x128xf32>
      %15 = vector.broadcast %14 : vector<1x128xf32> to vector<24x128xf32>
      %16 = arith.addf %13, %15 : vector<24x128xf32>
      %cst_15 = arith.constant 0.000000e+00 : f32
      %17 = vector.broadcast %cst_15 : f32 to vector<24x128xf32>
      %18 = arith.maximumf %16, %17 : vector<24x128xf32>
      %19 = arith.truncf %18 : vector<24x128xf32> to vector<24x128xbf16>
      %c0_16 = arith.constant 0 : index
      %c0_17 = arith.constant 0 : index
      %20 = vector.load %arg5[%c0_16, %c0_17] : memref<128x128xbf16, #tpu.memory_space<vmem>>, vector<128x128xbf16>
      %cst_18 = arith.constant dense<0.000000e+00> : vector<24x128xf32>
      %21 = tpu.matmul %19, %20, %cst_18 {dimension_numbers = #tpu.dot_dimension_numbers<[1], [0], [0], [1], [0, 0, 1, 1], [], []>} : vector<24x128xbf16>, vector<128x128xbf16>, vector<24x128xf32> -> vector<24x128xf32>
      %c0_19 = arith.constant 0 : index
      %c0_20 = arith.constant 0 : index
      %22 = vector.load %arg6[%c0_19, %c0_20] : memref<1x128xf32, #tpu.memory_space<vmem>>, vector<1x128xf32>
      %23 = vector.broadcast %22 : vector<1x128xf32> to vector<24x128xf32>
      %24 = arith.addf %21, %23 : vector<24x128xf32>
      %25 = vector.extract_strided_slice %24 {offsets = [0, 0], sizes = [8, 128], strides = [1, 1]} : vector<24x128xf32> to vector<8x128xf32>
      %26 = vector.extract_strided_slice %24 {offsets = [8, 0], sizes = [8, 128], strides = [1, 1]} : vector<24x128xf32> to vector<8x128xf32>
      %27 = vector.extract_strided_slice %24 {offsets = [16, 0], sizes = [8, 128], strides = [1, 1]} : vector<24x128xf32> to vector<8x128xf32>
      %28 = tpu.iota {dimensions = array<i32: 1>} : vector<1x128xi32>
      %c32_i32 = arith.constant 32 : i32
      %29 = vector.broadcast %c32_i32 : i32 to vector<1x128xi32>
      %30 = arith.cmpi slt, %28, %29 : vector<1x128xi32>
      %cst_21 = arith.constant 9.99999997E-7 : f32
      %cst_22 = arith.constant 0.000000e+00 : f32
      %31 = vector.broadcast %cst_21 : f32 to vector<1x128xf32>
      %32 = vector.broadcast %cst_22 : f32 to vector<1x128xf32>
      %33 = arith.select %30, %31, %32 : vector<1x128xi1>, vector<1x128xf32>
      %34 = arith.subf %25, %26 : vector<8x128xf32>
      %35 = vector.broadcast %33 : vector<1x128xf32> to vector<8x128xf32>
      %36 = arith.addf %34, %35 : vector<8x128xf32>
      %37 = arith.mulf %36, %36 : vector<8x128xf32>
      %cst_23 = arith.constant dense<0.000000e+00> : vector<8xf32>
      %38 = vector.multi_reduction <add>, %37, %cst_23 [1] : vector<8x128xf32> to vector<8xf32>
      %39 = vector.shape_cast %38 : vector<8xf32> to vector<8x1xf32>
      %40 = math.sqrt %39 : vector<8x1xf32>
      %41 = arith.subf %25, %27 : vector<8x128xf32>
      %42 = vector.broadcast %33 : vector<1x128xf32> to vector<8x128xf32>
      %43 = arith.addf %41, %42 : vector<8x128xf32>
      %44 = arith.mulf %43, %43 : vector<8x128xf32>
      %cst_24 = arith.constant dense<0.000000e+00> : vector<8xf32>
      %45 = vector.multi_reduction <add>, %44, %cst_24 [1] : vector<8x128xf32> to vector<8xf32>
      %46 = vector.shape_cast %45 : vector<8xf32> to vector<8x1xf32>
      %47 = math.sqrt %46 : vector<8x1xf32>
      %48 = arith.subf %40, %47 : vector<8x1xf32>
      %49 = vector.shape_cast %48 : vector<8x1xf32> to vector<8x1xf32>
      %50 = vector.broadcast %49 : vector<8x1xf32> to vector<8x128xf32>
      %c0_25 = arith.constant 0 : index
      %c0_26 = arith.constant 0 : index
      %51 = vector.load %arg7[%c0_25, %c0_26] : memref<8x128xf32, #tpu.memory_space<vmem>>, vector<8x128xf32>
      tpu.vector_store %arg7[%c0_25, %c0_26], %50 {strides = array<i32>} : memref<8x128xf32, #tpu.memory_space<vmem>>, vector<8x128xf32>,
    } else {
    }
    return
  }
  func.func @transform_0(%arg0: i32, %arg1: i32) -> (i32, i32, i32) {
    %c0_i32 = arith.constant 0 : i32
    %c0_i32_0 = arith.constant 0 : i32
    return %c0_i32, %arg0, %arg1 : i32, i32, i32
  }
  func.func @transform_1(%arg0: i32, %arg1: i32) -> (i32, i32) {
    %c0_i32 = arith.constant 0 : i32
    %c0_i32_0 = arith.constant 0 : i32
    return %arg1, %c0_i32 : i32, i32
  }
  func.func @transform_2(%arg0: i32, %arg1: i32) -> (i32, i32) {
    %c0_i32 = arith.constant 0 : i32
    %c0_i32_0 = arith.constant 0 : i32
    %c0_i32_1 = arith.constant 0 : i32
    return %c0_i32, %c0_i32_0 : i32, i32
  }
  func.func @transform_3(%arg0: i32, %arg1: i32) -> (i32, i32) {
    %c0_i32 = arith.constant 0 : i32
    %c0_i32_0 = arith.constant 0 : i32
    %c0_i32_1 = arith.constant 0 : i32
    return %c0_i32, %c0_i32_0 : i32, i32
  }
  func.func @transform_4(%arg0: i32, %arg1: i32) -> (i32, i32) {
    %c0_i32 = arith.constant 0 : i32
    %c0_i32_0 = arith.constant 0 : i32
    %c0_i32_1 = arith.constant 0 : i32
    return %c0_i32, %c0_i32_0 : i32, i32
  }
  func.func @transform_5(%arg0: i32, %arg1: i32) -> (i32, i32) {
    %c0_i32 = arith.constant 0 : i32
    %c0_i32_0 = arith.constant 0 : i32
    return %arg0, %c0_i32 : i32, i32
  }
}

</mosaic_0001>

<bundles_post_ra>
// kernel: siamese_forward.1
= control target key start
LH: loop header
LB: loop body
LE: loop exit
PB: predicated region body
PF: predicated region fallthrough
CT: control target
= control target key end

     0   :  { %s1604_s1 = inlined_call_operand.vmem [shape: bf16[1024,128], index: 1, kind: input, shape index: {}]   ;;  %s1605_s0 = inlined_call_operand.vmem [shape: bf16[3,8,1024], index: 0, kind: input, shape index: {}]   ;;  %s1606_s3 = inlined_call_operand.vmem [shape: bf16[128,128], index: 3, kind: input, shape index: {}]   ;;  %s1607_s2 = inlined_call_operand.vmem [shape: f32[1,128], index: 2, kind: input, shape index: {}]   ;;  %s1608_s4 = inlined_call_operand.vmem [shape: f32[1,128], index: 4, kind: input, shape index: {}]   ;;  %s1609_s5 = inlined_call_operand.vmem [shape: f32[8,128], index: 5, kind: output, shape index: {}]  }
   0x1   :  { %v1228_v0 = vld [vmem:[%s1604_s1 + $0x78] sm:$0xff]   ;;  %v1232_v4 = vld [vmem:[%s1604_s1 + $0x70] sm:$0xff]   ;;  %v1236_v8 = vld [vmem:[%s1604_s1 + $0x68] sm:$0xff]  }
   0x2   :  { %v1229_v1 = vld [vmem:[%s1604_s1 + $0xf8] sm:$0xff]   ;;  %1085 = vmatprep.subr.bf16.mxu0 %v1228_v0  ;;  %v1233_v5 = vld [vmem:[%s1604_s1 + $0xf0] sm:$0xff]   ;;  %v1237_v9 = vld [vmem:[%s1604_s1 + $0xe8] sm:$0xff]  }
   0x3   :  { %v1230_v2 = vld [vmem:[%s1604_s1 + $0x38] sm:$0xff]   ;;  %1113 = vmatprep.subr.bf16.mxu1 %v1229_v1  ;;  %v1234_v6 = vld [vmem:[%s1604_s1 + $0x30] sm:$0xff]   ;;  %v1238_v10 = vld [vmem:[%s1604_s1 + $0x28] sm:$0xff]  }
   0x4   :  { %v1231_v3 = vld [vmem:[%s1604_s1 + $0xb8] sm:$0xff]   ;;  %1086 = vmatpush3.bf16.msra.mxu0 %v1230_v2  ;;  %v1235_v7 = vld [vmem:[%s1604_s1 + $0xb0] sm:$0xff]   ;;  %v1239_v11 = vld [vmem:[%s1604_s1 + $0xa8] sm:$0xff]  }
   0x5   :  { %1114 = vmatpush3.bf16.msra.mxu1 %v1231_v3  ;;  %1087 = vmatprep.subr.bf16.mxu0 %v1232_v4  ;;  %v1240_v12 = vld [vmem:[%s1604_s1 + $0x60] sm:$0xff]   ;;  %v1244_v16 = vld [vmem:[%s1604_s1 + $0x58] sm:$0xff]   ;;  %v1248_v20 = vld [vmem:[%s1604_s1 + $0x50] sm:$0xff]  }
   0x6   :  { %1115 = vmatprep.subr.bf16.mxu1 %v1233_v5  ;;  %v1241_v13 = vld [vmem:[%s1604_s1 + $0xe0] sm:$0xff]   ;;  %v1245_v17 = vld [vmem:[%s1604_s1 + $0xd8] sm:$0xff]   ;;  %v1249_v21 = vld [vmem:[%s1604_s1 + $0xd0] sm:$0xff]  }
   0x7   :  { %v1242_v14 = vld [vmem:[%s1604_s1 + $0x20] sm:$0xff]   ;;  %v1246_v18 = vld [vmem:[%s1604_s1 + $0x18] sm:$0xff]   ;;  %v1250_v22 = vld [vmem:[%s1604_s1 + $0x10] sm:$0xff]  }
   0x8   :  { %1088 = vmatpush3.bf16.msra.mxu0 %v1234_v6  ;;  %v1243_v15 = vld [vmem:[%s1604_s1 + $0xa0] sm:$0xff]   ;;  %v1247_v19 = vld [vmem:[%s1604_s1 + $0x98] sm:$0xff]   ;;  %v1251_v23 = vld [vmem:[%s1604_s1 + $0x90] sm:$0xff]  }
   0x9   :  { %1116 = vmatpush3.bf16.msra.mxu1 %v1235_v7  ;;  %1089 = vmatprep.subr.bf16.mxu0 %v1236_v8  ;;  %v1252_v24 = vld [vmem:[%s1604_s1 + $0x48] sm:$0xff]   ;;  %v1256_v28 = vld [vmem:[%s1604_s1 + $0x40] sm:$0xff]   ;;  %v1260_v40 = vld [vmem:[%s1604_s1 + $0x178] sm:$0xff]  }
   0xa   :  { %1117 = vmatprep.subr.bf16.mxu1 %v1237_v9  ;;  %v1253_v25 = vld [vmem:[%s1604_s1 + $0xc8] sm:$0xff]   ;;  %v1257_v29 = vld [vmem:[%s1604_s1 + $0xc0] sm:$0xff]   ;;  %v1261_v41 = vld [vmem:[%s1604_s1 + $0x1f8] sm:$0xff]  }
   0xb   :  { %v1254_v26 = vld [vmem:[%s1604_s1 + $0x8] sm:$0xff]   ;;  %v1258_v30 = vld [vmem:[%s1604_s1] sm:$0xff]   ;;  %v1262_v42 = vld [vmem:[%s1604_s1 + $0x138] sm:$0xff]  }
   0xc   :  { %1090 = vmatpush3.bf16.msra.mxu0 %v1238_v10  ;;  %v1255_v27 = vld [vmem:[%s1604_s1 + $0x88] sm:$0xff]   ;;  %v1259_v31 = vld [vmem:[%s1604_s1 + $0x80] sm:$0xff]   ;;  %v1263_v43 = vld [vmem:[%s1604_s1 + $0x1b8] sm:$0xff]  }
   0xd   :  { %1118 = vmatpush3.bf16.msra.mxu1 %v1239_v11  ;;  %1091 = vmatprep.subr.bf16.mxu0 %v1240_v12  ;;  %v28_v32 = vld [vmem:[%s1605_s0] sm:$0xff]  ;;  %v29_v34 = vld [vmem:[%s1605_s0 + $0x8] sm:$0xff]  ;;  %v1264_v44 = vld [vmem:[%s1604_s1 + $0x170] sm:$0xff]  }
   0xe   :  { %1119 = vmatprep.subr.bf16.mxu1 %v1241_v13  ;;  %v32_v33 = vld [vmem:[%s1605_s0 + $0x20] sm:$0xff]  ;;  %v33_v37 = vld [vmem:[%s1605_s0 + $0x28] sm:$0xff]  ;;  %v1265_v45 = vld [vmem:[%s1604_s1 + $0x1f0] sm:$0xff]  }
   0xf   :  { %v995_v35 = vcombine.low %v28_v32, %v32_v33  ;;  %v996_v36 = vcombine.high %v28_v32, %v32_v33  ;;  %v997_v38 = vcombine.low %v29_v34, %v33_v37  ;;  %v998_v39 = vcombine.high %v29_v34, %v33_v37  ;;  %v1266_v46 = vld [vmem:[%s1604_s1 + $0x130] sm:$0xff]   ;;  %v1268_v48 = vld [vmem:[%s1604_s1 + $0x168] sm:$0xff]   ;;  %v1272_v52 = vld [vmem:[%s1604_s1 + $0x160] sm:$0xff]  }
  0x10   :  { %1092 = vmatpush3.bf16.msra.mxu0 %v1242_v14  ;;  %v1267_v47 = vld [vmem:[%s1604_s1 + $0x1b0] sm:$0xff]   ;;  %v1269_v49 = vld [vmem:[%s1604_s1 + $0x1e8] sm:$0xff]   ;;  %v1273_v53 = vld [vmem:[%s1604_s1 + $0x1e0] sm:$0xff]  }
  0x11   :  { %1120 = vmatpush3.bf16.msra.mxu1 %v1243_v15  ;;  %1093 = vmatprep.subr.bf16.mxu0 %v1244_v16  ;;  %v1270_v50 = vld [vmem:[%s1604_s1 + $0x128] sm:$0xff]   ;;  %v1274_v54 = vld [vmem:[%s1604_s1 + $0x120] sm:$0xff]   ;;  %v1276_v56 = vld [vmem:[%s1604_s1 + $0x158] sm:$0xff]  }
  0x12   :  { %1121 = vmatprep.subr.bf16.mxu1 %v1245_v17  ;;  %655 = vmatprep.mubr.bf16.mxu0 %v996_v36  ;;  %v1271_v51 = vld [vmem:[%s1604_s1 + $0x1a8] sm:$0xff]   ;;  %v1275_v55 = vld [vmem:[%s1604_s1 + $0x1a0] sm:$0xff]   ;;  %v1277_v57 = vld [vmem:[%s1604_s1 + $0x1d8] sm:$0xff]  }
  0x13   :  { %703 = vmatprep.mubr.bf16.mxu1 %v998_v39  ;;  %v36_v58 = vld [vmem:[%s1605_s0 + $0x40] sm:$0xff]  ;;  %v1279_v60 = vld [vmem:[%s1604_s1 + $0x118] sm:$0xff]   ;;  %v37_v63 = vld [vmem:[%s1605_s0 + $0x48] sm:$0xff] }
  0x14   :  { %1094 = vmatpush3.bf16.msra.mxu0 %v1246_v18  ;;  %v1004_v59 = vcombine.high %v36_v58, %v36_v58  ;;  %v1003_v61 = vcombine.low %v36_v58, %v36_v58  ;;  %v1280_v62 = vld [vmem:[%s1604_s1 + $0x198] sm:$0xff]   ;;  %v1006_v0 = vcombine.high %v37_v63, %v37_v63  ;;  %v1005_v1 = vcombine.low %v37_v63, %v37_v63  ;;  %v1284_v2 = vld [vmem:[%s1604_s1 + $0x150] sm:$0xff]   ;;  %v1288_v6 = vld [vmem:[%s1604_s1 + $0x148] sm:$0xff]  }
  0x15   :  { %1122 = vmatpush3.bf16.msra.mxu1 %v1247_v19  ;;  %1095 = vmatprep.subr.bf16.mxu0 %v1248_v20  ;;  %v1285_v3 = vld [vmem:[%s1604_s1 + $0x1d0] sm:$0xff]   ;;  %v1289_v7 = vld [vmem:[%s1604_s1 + $0x1c8] sm:$0xff]   ;;  %v1292_v10 = vld [vmem:[%s1604_s1 + $0x140] sm:$0xff]  }
  0x16   :  { %1123 = vmatprep.subr.bf16.mxu1 %v1249_v21  ;;  %v1286_v4 = vld [vmem:[%s1604_s1 + $0x110] sm:$0xff]   ;;  %v1290_v8 = vld [vmem:[%s1604_s1 + $0x108] sm:$0xff]   ;;  %v1293_v11 = vld [vmem:[%s1604_s1 + $0x1c0] sm:$0xff]  }
  0x17   :  { %v1287_v5 = vld [vmem:[%s1604_s1 + $0x190] sm:$0xff]   ;;  %v1291_v9 = vld [vmem:[%s1604_s1 + $0x188] sm:$0xff]   ;;  %v1294_v12 = vld [vmem:[%s1604_s1 + $0x100] sm:$0xff]  }
  0x18   :  { %1096 = vmatpush3.bf16.msra.mxu0 %v1250_v22  ;;  %v1295_v13 = vld [vmem:[%s1604_s1 + $0x180] sm:$0xff]   ;;  %v30_v14 = vld [vmem:[%s1605_s0 + $0x10] sm:$0xff]  ;;  %v31_v16 = vld [vmem:[%s1605_s0 + $0x18] sm:$0xff] }
  0x19   :  { %1124 = vmatpush3.bf16.msra.mxu1 %v1251_v23  ;;  %1097 = vmatprep.subr.bf16.mxu0 %v1252_v24  ;;  %v34_v15 = vld [vmem:[%s1605_s0 + $0x30] sm:$0xff]  ;;  %v35_v19 = vld [vmem:[%s1605_s0 + $0x38] sm:$0xff]  ;;  %v1306_v34 = vld [vmem:[%s1606_s3 + $0x8] sm:$0xff]  }
  0x1a   :  { %1125 = vmatprep.subr.bf16.mxu1 %v1253_v25  ;;  %v999_v17 = vcombine.low %v30_v14, %v34_v15  ;;  %v1000_v18 = vcombine.high %v30_v14, %v34_v15  ;;  %v38_v20 = vld [vmem:[%s1605_s0 + $0x50] sm:$0xff]  ;;  %v39_v21 = vld [vmem:[%s1605_s0 + $0x58] sm:$0xff]  ;;  %v1001_v22 = vcombine.low %v31_v16, %v35_v19  ;;  %v1002_v23 = vcombine.high %v31_v16, %v35_v19 }
  0x1b   :  { %v1008_v24 = vcombine.high %v38_v20, %v38_v20  ;;  %v1010_v25 = vcombine.high %v39_v21, %v39_v21  ;;  %v1304_v32 = vld [vmem:[%s1606_s3 + $0x18] sm:$0xff]   ;;  %v1305_v33 = vld [vmem:[%s1606_s3 + $0x10] sm:$0xff]  }
  0x1c   :  { %1098 = vmatpush3.bf16.msra.mxu0 %v1254_v26  ;;  %v1007_v26 = vcombine.low %v38_v20, %v38_v20 }
  0x1d   :  { %1126 = vmatpush3.bf16.msra.mxu1 %v1255_v27  ;;  %1099 = vmatprep.subr.bf16.mxu0 %v1256_v28  ;;  %v1009_v27 = vcombine.low %v39_v21, %v39_v21  ;;  %v1300_v28 = vld [vmem:[%s1606_s3 + $0x38] sm:$0xff]  }
  0x1e   :  { %1127 = vmatprep.subr.bf16.mxu1 %v1257_v29  ;;  %v1301_v29 = vld [vmem:[%s1606_s3 + $0x30] sm:$0xff]  }
  0x20   :  { %1100 = vmatpush3.bf16.msra.mxu0 %v1258_v30  ;;  %v1302_v30 = vld [vmem:[%s1606_s3 + $0x28] sm:$0xff]  }
  0x21   :  { %1128 = vmatpush3.bf16.msra.mxu1 %v1259_v31  ;;  %1141 = vmatprep.subr.bf16.mxu0 %v1260_v40  ;;  %v1303_v31 = vld [vmem:[%s1606_s3 + $0x20] sm:$0xff]  }
  0x22   :  { %1169 = vmatprep.subr.bf16.mxu1 %v1261_v41 }
  0x23   :  { %656 = vmatmul.mubr.bf16.vlgmr.msra.gmra.mxu0 %v995_v35  ;;  %v1307_v35 = vld [vmem:[%s1606_s3] sm:$0xff]  }
  0x24   :  { %704 = vmatmul.mubr.bf16.vlgmr.msra.gmra.mxu1 %v997_v38  ;;  %1142 = vmatpush3.bf16.msra.mxu0 %v1262_v42 }
  0x25   :  { %1170 = vmatpush3.bf16.msra.mxu1 %v1263_v43  ;;  %1143 = vmatprep.subr.bf16.mxu0 %v1264_v44 }
  0x26   :  { %1171 = vmatprep.subr.bf16.mxu1 %v1265_v45  ;;  %663 = vmatprep.mubr.bf16.mxu0 %v1004_v59 }
  0x27   :  { %711 = vmatprep.mubr.bf16.mxu1 %v1006_v0 }
  0x28   :  { %1144 = vmatpush3.bf16.msra.mxu0 %v1266_v46 }
  0x29   :  { %1172 = vmatpush3.bf16.msra.mxu1 %v1267_v47  ;;  %1145 = vmatprep.subr.bf16.mxu0 %v1268_v48 }
  0x2a   :  { %1173 = vmatprep.subr.bf16.mxu1 %v1269_v49 }
  0x2b   :  { %664 = vmatmul.mubr.bf16.gmra.mxu0 %v1003_v61 }
  0x2c   :  { %1146 = vmatpush3.bf16.msra.mxu0 %v1270_v50  ;;  %712 = vmatmul.mubr.bf16.gmra.mxu1 %v1005_v1 }
  0x2d   :  { %1174 = vmatpush3.bf16.msra.mxu1 %v1271_v51  ;;  %1147 = vmatprep.subr.bf16.mxu0 %v1272_v52 }
  0x2e   :  { %1175 = vmatprep.subr.bf16.mxu1 %v1273_v53  ;;  %751 = vmatprep.mubr.bf16.mxu0 %v1000_v18 }
  0x2f   :  { %799 = vmatprep.mubr.bf16.mxu1 %v1002_v23 }
  0x30   :  { %1148 = vmatpush3.bf16.msra.mxu0 %v1274_v54 }
  0x31   :  { %1176 = vmatpush3.bf16.msra.mxu1 %v1275_v55  ;;  %1149 = vmatprep.subr.bf16.mxu0 %v1276_v56 }
  0x32   :  { %1177 = vmatprep.subr.bf16.mxu1 %v1277_v57 }
  0x34   :  { %1150 = vmatpush3.bf16.msra.mxu0 %v1279_v60 }
  0x35   :  { %1178 = vmatpush3.bf16.msra.mxu1 %v1280_v62  ;;  %1151 = vmatprep.subr.bf16.mxu0 %v1284_v2 }
  0x36   :  { %1179 = vmatprep.subr.bf16.mxu1 %v1285_v3 }
  0x38   :  { %1152 = vmatpush3.bf16.msra.mxu0 %v1286_v4 }
  0x39   :  { %1180 = vmatpush3.bf16.msra.mxu1 %v1287_v5  ;;  %1153 = vmatprep.subr.bf16.mxu0 %v1288_v6 }
  0x3a   :  { %1181 = vmatprep.subr.bf16.mxu1 %v1289_v7 }
  0x3c   :  { %1154 = vmatpush3.bf16.msra.mxu0 %v1290_v8 }
  0x3d   :  { %1182 = vmatpush3.bf16.msra.mxu1 %v1291_v9  ;;  %1155 = vmatprep.subr.bf16.mxu0 %v1292_v10  ;;  %v1075_v9 = vld [vmem:[%s1607_s2] ss:$0 sm:$0xff] }
  0x3e   :  { %1183 = vmatprep.subr.bf16.mxu1 %v1293_v11 }
  0x40   :  { %1156 = vmatpush3.bf16.msra.mxu0 %v1294_v12 }
  0x41   :  { %1184 = vmatpush3.bf16.msra.mxu1 %v1295_v13  ;;  %1207 = vmatprep.subr.bf16.mxu0 %v1300_v28 }
  0x43   :  { %752 = vmatmul.mubr.bf16.vlgmr.msra.gmra.mxu0 %v999_v17 }
  0x44   :  { %800 = vmatmul.mubr.bf16.vlgmr.msra.gmra.mxu1 %v1001_v22  ;;  %759 = vmatprep.mubr.bf16.mxu0 %v1008_v24 }
  0x45   :  { %807 = vmatprep.mubr.bf16.mxu1 %v1010_v25  ;;  %1208 = vmatpush3.bf16.msra.mxu0 %v1300_v28 }
  0x46   :  { %1209 = vmatprep.subr.bf16.mxu0 %v1301_v29 }
  0x49   :  { %1210 = vmatpush3.bf16.msra.mxu0 %v1301_v29 }
  0x4a   :  { %1211 = vmatprep.subr.bf16.mxu0 %v1302_v30 }
  0x4b   :  { %760 = vmatmul.mubr.bf16.gmra.mxu0 %v1007_v26 }
  0x4c   :  { %808 = vmatmul.mubr.bf16.gmra.mxu1 %v1009_v27 }
  0x4d   :  { %1212 = vmatpush3.bf16.msra.mxu0 %v1302_v30 }
  0x4e   :  { %1213 = vmatprep.subr.bf16.mxu0 %v1303_v31 }
  0x51   :  { %1214 = vmatpush3.bf16.msra.mxu0 %v1303_v31 }
  0x52   :  { %1215 = vmatprep.subr.bf16.mxu0 %v1304_v32 }
  0x55   :  { %1216 = vmatpush3.bf16.msra.mxu0 %v1304_v32 }
  0x56   :  { %1217 = vmatprep.subr.bf16.mxu0 %v1305_v33 }
  0x59   :  { %1218 = vmatpush3.bf16.msra.mxu0 %v1305_v33 }
  0x5a   :  { %1219 = vmatprep.subr.bf16.mxu0 %v1306_v34 }
  0x5d   :  { %1220 = vmatpush3.bf16.msra.mxu0 %v1306_v34  ;;  %v961_v34 = vlaneseq }
  0x5e   :  { %1221 = vmatprep.subr.bf16.mxu0 %v1307_v35 }
  0x61   :  { %1222 = vmatpush3.bf16.msra.mxu0 %v1307_v35 }
  0xe3   :  { %v1101_v36 = vpop.f32.mrf.mxu0 }
  0xe4   :  { %v1129_v37 = vpop.f32.mrf.mxu1 }
  0xe5   :  { %v1102_v38 = vpop.f32.mrf.mxu0 }
  0xe6   :  { %v1130_v39 = vpop.f32.mrf.mxu1  ;;  %v1103_v52 = vadd.f32 %v1102_v38, %v1101_v36  ;;  %v1076_v38 = vld [vmem:[%s1608_s4] ss:$0 sm:$0xff] }
  0xe7   :  { %v1104_v40 = vpop.f32.mrf.mxu0  ;;  %v1131_v53 = vadd.f32 %v1130_v39, %v1129_v37  ;;  %v962_v37 = vand.u32 127, %v961_v34 }
  0xe8   :  { %v1132_v41 = vpop.f32.mrf.mxu1 }
  0xe9   :  { %v1105_v42 = vpop.f32.mrf.mxu0  ;;  %v706_v59 = vadd.f32 %v1131_v53, %v1103_v52  ;;  %vm963_vm0 = vcmp.lt.s32.totalorder %v962_v37, 32 }
  0xea   :  { %v1133_v43 = vpop.f32.mrf.mxu1  ;;  %v1106_v56 = vadd.f32 %v1105_v42, %v1104_v40 }
  0xeb   :  { %v1107_v44 = vpop.f32.mrf.mxu0  ;;  %v1134_v57 = vadd.f32 %v1133_v43, %v1132_v41 }
  0xec   :  { %v1135_v46 = vpop.f32.mrf.mxu1 }
  0xed   :  { %v1108_v45 = vpop.f32.mrf.mxu0  ;;  %v709_v2 = vadd.f32 %v1134_v57, %v1106_v56 }
  0xee   :  { %v1136_v48 = vpop.f32.mrf.mxu1  ;;  %v1109_v4 = vadd.f32 %v1108_v45, %v1107_v44 }
  0xef   :  { %v1110_v47 = vpop.f32.mrf.mxu0  ;;  %v1137_v5 = vadd.f32 %v1136_v48, %v1135_v46  ;;  %v1312_v46 = vmov 0.0  }
  0xf0   :  { %v1138_v50 = vpop.f32.mrf.mxu1  ;;  %v964_v47 = vsel %vm963_vm0, 1e-06, %v1312_v46 }
  0xf1   :  { %v1111_v49 = vpop.f32.mrf.mxu0  ;;  %v714_v15 = vadd.f32 %v1137_v5, %v1109_v4 }
  0xf2   :  { %v1139_v51 = vpop.f32.mrf.mxu1 }
 0x103   :  { %v1157_v54 = vpop.f32.mrf.mxu0 }
 0x104   :  { %v1185_v55 = vpop.f32.mrf.mxu1 }
 0x105   :  { %v1158_v58 = vpop.f32.mrf.mxu0 }
 0x106   :  { %v1159_v60 = vadd.f32 %v1158_v58, %v1157_v54  ;;  %v1186_v61 = vpop.f32.mrf.mxu1 }
 0x107   :  { %v1160_v62 = vpop.f32.mrf.mxu0  ;;  %v1187_v0 = vadd.f32 %v1186_v61, %v1185_v55 }
 0x108   :  { %v754_v63 = vadd.f32 %v1159_v60, %v706_v59  ;;  %v1188_v1 = vpop.f32.mrf.mxu1 }
 0x109   :  { %v1161_v3 = vpop.f32.mrf.mxu0 }
 0x10a   :  { %v802_v6 = vadd.f32 %v1187_v0, %v754_v63  ;;  %v1162_v7 = vadd.f32 %v1161_v3, %v1160_v62  ;;  %v1189_v8 = vpop.f32.mrf.mxu1 }
 0x10b   :  { %v1163_v10 = vpop.f32.mrf.mxu0  ;;  %v1190_v12 = vadd.f32 %v1189_v8, %v1188_v1 }
 0x10c   :  { %v757_v11 = vadd.f32 %v1162_v7, %v709_v2  ;;  %v1191_v13 = vpop.f32.mrf.mxu1  ;;  %v834_v16 = vadd.f32 %v1075_v9, %v802_v6 }
 0x10d   :  { %v1164_v14 = vpop.f32.mrf.mxu0 }
 0x10e   :  { %v805_v17 = vadd.f32 %v1190_v12, %v757_v11  ;;  %v1165_v18 = vadd.f32 %v1164_v14, %v1163_v10  ;;  %v1192_v19 = vpop.f32.mrf.mxu1  ;;  %v837_v26 = vmax.f32 %v834_v16, 0.0 }
 0x10f   :  { %v1166_v20 = vpop.f32.mrf.mxu0  ;;  %v1193_v23 = vadd.f32 %v1192_v19, %v1191_v13 }
 0x110   :  { %v835_v21 = vadd.f32 %v1075_v9, %v805_v17  ;;  %v762_v22 = vadd.f32 %v1165_v18, %v714_v15  ;;  %v1194_v24 = vpop.f32.mrf.mxu1 }
 0x111   :  { %v1167_v25 = vpop.f32.mrf.mxu0 }
 0x112   :  { %v838_v27 = vmax.f32 %v835_v21, 0.0  ;;  %v810_v28 = vadd.f32 %v1193_v23, %v762_v22  ;;  %v1195_v29 = vpop.f32.mrf.mxu1 }
 0x114   :  { %v836_v30 = vadd.f32 %v1075_v9, %v810_v28  ;;  %v840_v31 = vpack.c.bf16 %v838_v27, %v837_v26 }
 0x116   :  { %v839_v32 = vmax.f32 %v836_v30, 0.0  ;;  %1223 = vmatprep.mubr.bf16.mxu0 %v840_v31 }
 0x118   :  { %v841_v33 = vpack.c.bf16 %v839_v32, %v839_v32 }
 0x11a   :  { %1224 = vmatmul.mubr.bf16.vlgmr.msra.gmra.mxu0 %v841_v33 }
 0x1da   :  { %v1225_v35 = vpop.f32.mrf.mxu0 }
 0x1db   :  { %v956_v42 = vadd.f32 %v1225_v35, %v1076_v38 }
 0x1dc   :  { %v947_v36 = vpop.f32.mrf.mxu0 }
 0x1dd   :  { %v948_v40 = vadd.f32 %v1076_v38, %v947_v36 }
 0x1de   :  { %v1226_v39 = vpop.f32.mrf.mxu0 }
 0x1df   :  { %v977_v44 = vsub.f32 %v948_v40, %v956_v42 }
 0x1e0   :  { %v950_v41 = vpop.f32.mrf.mxu0 }
 0x1e1   :  { %v951_v43 = vadd.f32 %v1076_v38, %v950_v41  ;;  %v978_v50 = vadd.f32 %v977_v44, %v964_v47 }
 0x1e3   :  { %v965_v45 = vsub.f32 %v948_v40, %v951_v43  ;;  %v979_v51 = vmul.f32 %v978_v50, %v978_v50 }
 0x1e5   :  { %v966_v48 = vadd.f32 %v965_v45, %v964_v47 }
 0x1e7   :  { %v967_v49 = vmul.f32 %v966_v48, %v966_v48 }
 0x1e9   :  { %968 = vadd.xlane.f32.xlu0 %v967_v49 }
 0x1ed   :  { %980 = vadd.xlane.f32.xlu0 %v979_v51 }
 0x272   :  { %v969_v52 = vpop.xlane.xlu0 %968 }
 0x273   :  { %1308 = vrsqrt.f32 %v969_v52  ;;  %vm972_vm1 = vcmp.eq.f32.partialorder %v969_v52, inf  ;;  %v975_v59 = vand.u32 2147483648, %v969_v52  ;;  %vm974_vm3 = vcmp.eq.f32.partialorder %v969_v52, 0.0 }
 0x276   :  { %v981_v53 = vpop.xlane.xlu0 %980 }
 0x277   :  { %1310 = vrsqrt.f32 %v981_v53  ;;  %vm984_vm2 = vcmp.eq.f32.partialorder %v981_v53, inf  ;;  %v987_v60 = vand.u32 2147483648, %v981_v53  ;;  %vm986_vm4 = vcmp.eq.f32.partialorder %v981_v53, 0.0 }
 0x280   :  { %v1309_v54 = vpop.eup %1308 }
 0x281   :  { %v971_v55 = vmul.f32 %v1309_v54, %v969_v52 }
 0x283   :  { %v973_v57 = vsel %vm972_vm1, %v969_v52, %v971_v55 }
 0x284   :  { %v1311_v56 = vpop.eup %1310  ;;  %v976_v62 = vsel %vm974_vm3, %v975_v59, %v973_v57 }
 0x285   :  { %v983_v58 = vmul.f32 %v1311_v56, %v981_v53 }
 0x287   :  { %v985_v61 = vsel %vm984_vm2, %v981_v53, %v983_v58 }
 0x288   :  { %v988_v63 = vsel %vm986_vm4, %v987_v60, %v985_v61 }
 0x289   :  { %v989_v0 = vsub.f32 %v976_v62, %v988_v63 }
 0x28b   :  { %990 = vst [vmem:[%s1609_s5] sm:$0xff] %v989_v0 }

// kernel: siamese_forward.1
= control target key start
LH: loop header
LB: loop body
LE: loop exit
PB: predicated region body
PF: predicated region fallthrough
CT: control target
= control target key end

     0   :  { %s1604_s1 = inlined_call_operand.vmem [shape: bf16[1024,128], index: 1, kind: input, shape index: {}]   ;;  %s1605_s0 = inlined_call_operand.vmem [shape: bf16[3,8,1024], index: 0, kind: input, shape index: {}]   ;;  %s1606_s3 = inlined_call_operand.vmem [shape: bf16[128,128], index: 3, kind: input, shape index: {}]   ;;  %s1607_s2 = inlined_call_operand.vmem [shape: f32[1,128], index: 2, kind: input, shape index: {}]   ;;  %s1608_s4 = inlined_call_operand.vmem [shape: f32[1,128], index: 4, kind: input, shape index: {}]   ;;  %s1609_s5 = inlined_call_operand.vmem [shape: f32[8,128], index: 5, kind: output, shape index: {}]  }
   0x1   :  { %v1228_v0 = vld [vmem:[%s1604_s1 + $0x78] sm:$0xff]   ;;  %v1232_v4 = vld [vmem:[%s1604_s1 + $0x70] sm:$0xff]   ;;  %v1236_v8 = vld [vmem:[%s1604_s1 + $0x68] sm:$0xff]  }
   0x2   :  { %v1229_v1 = vld [vmem:[%s1604_s1 + $0xf8] sm:$0xff]   ;;  %1085 = vmatprep.subr.bf16.mxu0 %v1228_v0  ;;  %v1233_v5 = vld [vmem:[%s1604_s1 + $0xf0] sm:$0xff]   ;;  %v1237_v9 = vld [vmem:[%s1604_s1 + $0xe8] sm:$0xff]  }
   0x3   :  { %v1230_v2 = vld [vmem:[%s1604_s1 + $0x38] sm:$0xff]   ;;  %1113 = vmatprep.subr.bf16.mxu1 %v1229_v1  ;;  %v1234_v6 = vld [vmem:[%s1604_s1 + $0x30] sm:$0xff]   ;;  %v1238_v10 = vld [vmem:[%s1604_s1 + $0x28] sm:$0xff]  }
   0x4   :  { %v1231_v3 = vld [vmem:[%s1604_s1 + $0xb8] sm:$0xff]   ;;  %1086 = vmatpush3.bf16.msra.mxu0 %v1230_v2  ;;  %v1235_v7 = vld [vmem:[%s1604_s1 + $0xb0] sm:$0xff]   ;;  %v1239_v11 = vld [vmem:[%s1604_s1 + $0xa8] sm:$0xff]  }
   0x5   :  { %1114 = vmatpush3.bf16.msra.mxu1 %v1231_v3  ;;  %1087 = vmatprep.subr.bf16.mxu0 %v1232_v4  ;;  %v1240_v12 = vld [vmem:[%s1604_s1 + $0x60] sm:$0xff]   ;;  %v1244_v16 = vld [vmem:[%s1604_s1 + $0x58] sm:$0xff]   ;;  %v1248_v20 = vld [vmem:[%s1604_s1 + $0x50] sm:$0xff]  }
   0x6   :  { %1115 = vmatprep.subr.bf16.mxu1 %v1233_v5  ;;  %v1241_v13 = vld [vmem:[%s1604_s1 + $0xe0] sm:$0xff]   ;;  %v1245_v17 = vld [vmem:[%s1604_s1 + $0xd8] sm:$0xff]   ;;  %v1249_v21 = vld [vmem:[%s1604_s1 + $0xd0] sm:$0xff]  }
   0x7   :  { %v1242_v14 = vld [vmem:[%s1604_s1 + $0x20] sm:$0xff]   ;;  %v1246_v18 = vld [vmem:[%s1604_s1 + $0x18] sm:$0xff]   ;;  %v1250_v22 = vld [vmem:[%s1604_s1 + $0x10] sm:$0xff]  }
   0x8   :  { %1088 = vmatpush3.bf16.msra.mxu0 %v1234_v6  ;;  %v1243_v15 = vld [vmem:[%s1604_s1 + $0xa0] sm:$0xff]   ;;  %v1247_v19 = vld [vmem:[%s1604_s1 + $0x98] sm:$0xff]   ;;  %v1251_v23 = vld [vmem:[%s1604_s1 + $0x90] sm:$0xff]  }
   0x9   :  { %1116 = vmatpush3.bf16.msra.mxu1 %v1235_v7  ;;  %1089 = vmatprep.subr.bf16.mxu0 %v1236_v8  ;;  %v1252_v24 = vld [vmem:[%s1604_s1 + $0x48] sm:$0xff]   ;;  %v1256_v28 = vld [vmem:[%s1604_s1 + $0x40] sm:$0xff]   ;;  %v1260_v40 = vld [vmem:[%s1604_s1 + $0x178] sm:$0xff]  }
   0xa   :  { %1117 = vmatprep.subr.bf16.mxu1 %v1237_v9  ;;  %v1253_v25 = vld [vmem:[%s1604_s1 + $0xc8] sm:$0xff]   ;;  %v1257_v29 = vld [vmem:[%s1604_s1 + $0xc0] sm:$0xff]   ;;  %v1261_v41 = vld [vmem:[%s1604_s1 + $0x1f8] sm:$0xff]  }
   0xb   :  { %v1254_v26 = vld [vmem:[%s1604_s1 + $0x8] sm:$0xff]   ;;  %v1258_v30 = vld [vmem:[%s1604_s1] sm:$0xff]   ;;  %v1262_v42 = vld [vmem:[%s1604_s1 + $0x138] sm:$0xff]  }
   0xc   :  { %1090 = vmatpush3.bf16.msra.mxu0 %v1238_v10  ;;  %v1255_v27 = vld [vmem:[%s1604_s1 + $0x88] sm:$0xff]   ;;  %v1259_v31 = vld [vmem:[%s1604_s1 + $0x80] sm:$0xff]   ;;  %v1263_v43 = vld [vmem:[%s1604_s1 + $0x1b8] sm:$0xff]  }
   0xd   :  { %1118 = vmatpush3.bf16.msra.mxu1 %v1239_v11  ;;  %1091 = vmatprep.subr.bf16.mxu0 %v1240_v12  ;;  %v28_v32 = vld [vmem:[%s1605_s0] sm:$0xff]  ;;  %v29_v34 = vld [vmem:[%s1605_s0 + $0x8] sm:$0xff]  ;;  %v1264_v44 = vld [vmem:[%s1604_s1 + $0x170] sm:$0xff]  }
   0xe   :  { %1119 = vmatprep.subr.bf16.mxu1 %v1241_v13  ;;  %v32_v33 = vld [vmem:[%s1605_s0 + $0x20] sm:$0xff]  ;;  %v33_v37 = vld [vmem:[%s1605_s0 + $0x28] sm:$0xff]  ;;  %v1265_v45 = vld [vmem:[%s1604_s1 + $0x1f0] sm:$0xff]  }
   0xf   :  { %v995_v35 = vcombine.low %v28_v32, %v32_v33  ;;  %v996_v36 = vcombine.high %v28_v32, %v32_v33  ;;  %v997_v38 = vcombine.low %v29_v34, %v33_v37  ;;  %v998_v39 = vcombine.high %v29_v34, %v33_v37  ;;  %v1266_v46 = vld [vmem:[%s1604_s1 + $0x130] sm:$0xff]   ;;  %v1268_v48 = vld [vmem:[%s1604_s1 + $0x168] sm:$0xff]   ;;  %v1272_v52 = vld [vmem:[%s1604_s1 + $0x160] sm:$0xff]  }
  0x10   :  { %1092 = vmatpush3.bf16.msra.mxu0 %v1242_v14  ;;  %v1267_v47 = vld [vmem:[%s1604_s1 + $0x1b0] sm:$0xff]   ;;  %v1269_v49 = vld [vmem:[%s1604_s1 + $0x1e8] sm:$0xff]   ;;  %v1273_v53 = vld [vmem:[%s1604_s1 + $0x1e0] sm:$0xff]  }
  0x11   :  { %1120 = vmatpush3.bf16.msra.mxu1 %v1243_v15  ;;  %1093 = vmatprep.subr.bf16.mxu0 %v1244_v16  ;;  %v1270_v50 = vld [vmem:[%s1604_s1 + $0x128] sm:$0xff]   ;;  %v1274_v54 = vld [vmem:[%s1604_s1 + $0x120] sm:$0xff]   ;;  %v1276_v56 = vld [vmem:[%s1604_s1 + $0x158] sm:$0xff]  }
  0x12   :  { %1121 = vmatprep.subr.bf16.mxu1 %v1245_v17  ;;  %655 = vmatprep.mubr.bf16.mxu0 %v996_v36  ;;  %v1271_v51 = vld [vmem:[%s1604_s1 + $0x1a8] sm:$0xff]   ;;  %v1275_v55 = vld [vmem:[%s1604_s1 + $0x1a0] sm:$0xff]   ;;  %v1277_v57 = vld [vmem:[%s1604_s1 + $0x1d8] sm:$0xff]  }
  0x13   :  { %703 = vmatprep.mubr.bf16.mxu1 %v998_v39  ;;  %v36_v58 = vld [vmem:[%s1605_s0 + $0x40] sm:$0xff]  ;;  %v1279_v60 = vld [vmem:[%s1604_s1 + $0x118] sm:$0xff]   ;;  %v37_v63 = vld [vmem:[%s1605_s0 + $0x48] sm:$0xff] }
  0x14   :  { %1094 = vmatpush3.bf16.msra.mxu0 %v1246_v18  ;;  %v1004_v59 = vcombine.high %v36_v58, %v36_v58  ;;  %v1003_v61 = vcombine.low %v36_v58, %v36_v58  ;;  %v1280_v62 = vld [vmem:[%s1604_s1 + $0x198] sm:$0xff]   ;;  %v1006_v0 = vcombine.high %v37_v63, %v37_v63  ;;  %v1005_v1 = vcombine.low %v37_v63, %v37_v63  ;;  %v1284_v2 = vld [vmem:[%s1604_s1 + $0x150] sm:$0xff]   ;;  %v1288_v6 = vld [vmem:[%s1604_s1 + $0x148] sm:$0xff]  }
  0x15   :  { %1122 = vmatpush3.bf16.msra.mxu1 %v1247_v19  ;;  %1095 = vmatprep.subr.bf16.mxu0 %v1248_v20  ;;  %v1285_v3 = vld [vmem:[%s1604_s1 + $0x1d0] sm:$0xff]   ;;  %v1289_v7 = vld [vmem:[%s1604_s1 + $0x1c8] sm:$0xff]   ;;  %v1292_v10 = vld [vmem:[%s1604_s1 + $0x140] sm:$0xff]  }
  0x16   :  { %1123 = vmatprep.subr.bf16.mxu1 %v1249_v21  ;;  %v1286_v4 = vld [vmem:[%s1604_s1 + $0x110] sm:$0xff]   ;;  %v1290_v8 = vld [vmem:[%s1604_s1 + $0x108] sm:$0xff]   ;;  %v1293_v11 = vld [vmem:[%s1604_s1 + $0x1c0] sm:$0xff]  }
  0x17   :  { %v1287_v5 = vld [vmem:[%s1604_s1 + $0x190] sm:$0xff]   ;;  %v1291_v9 = vld [vmem:[%s1604_s1 + $0x188] sm:$0xff]   ;;  %v1294_v12 = vld [vmem:[%s1604_s1 + $0x100] sm:$0xff]  }
  0x18   :  { %1096 = vmatpush3.bf16.msra.mxu0 %v1250_v22  ;;  %v1295_v13 = vld [vmem:[%s1604_s1 + $0x180] sm:$0xff]   ;;  %v30_v14 = vld [vmem:[%s1605_s0 + $0x10] sm:$0xff]  ;;  %v31_v16 = vld [vmem:[%s1605_s0 + $0x18] sm:$0xff] }
  0x19   :  { %1124 = vmatpush3.bf16.msra.mxu1 %v1251_v23  ;;  %1097 = vmatprep.subr.bf16.mxu0 %v1252_v24  ;;  %v34_v15 = vld [vmem:[%s1605_s0 + $0x30] sm:$0xff]  ;;  %v35_v19 = vld [vmem:[%s1605_s0 + $0x38] sm:$0xff]  ;;  %v1306_v34 = vld [vmem:[%s1606_s3 + $0x8] sm:$0xff]  }
  0x1a   :  { %1125 = vmatprep.subr.bf16.mxu1 %v1253_v25  ;;  %v999_v17 = vcombine.low %v30_v14, %v34_v15  ;;  %v1000_v18 = vcombine.high %v30_v14, %v34_v15  ;;  %v38_v20 = vld [vmem:[%s1605_s0 + $0x50] sm:$0xff]  ;;  %v39_v21 = vld [vmem:[%s1605_s0 + $0x58] sm:$0xff]  ;;  %v1001_v22 = vcombine.low %v31_v16, %v35_v19  ;;  %v1002_v23 = vcombine.high %v31_v16, %v35_v19 }
  0x1b   :  { %v1008_v24 = vcombine.high %v38_v20, %v38_v20  ;;  %v1010_v25 = vcombine.high %v39_v21, %v39_v21  ;;  %v1304_v32 = vld [vmem:[%s1606_s3 + $0x18] sm:$0xff]   ;;  %v1305_v33 = vld [vmem:[%s1606_s3 + $0x10] sm:$0xff]  }
  0x1c   :  { %1098 = vmatpush3.bf16.msra.mxu0 %v1254_v26  ;;  %v1007_v26 = vcombine.low %v38_v20, %v38_v20 }
  0x1d   :  { %1126 = vmatpush3.bf16.msra.mxu1 %v1255_v27  ;;  %1099 = vmatprep.subr.bf16.mxu0 %v1256_v28  ;;  %v1009_v27 = vcombine.low %v39_v21, %v39_v21  ;;  %v1300_v28 = vld [vmem:[%s1606_s3 + $0x38] sm:$0xff]  }
  0x1e   :  { %1127 = vmatprep.subr.bf16.mxu1 %v1257_v29  ;;  %v1301_v29 = vld [vmem:[%s1606_s3 + $0x30] sm:$0xff]  }
  0x20   :  { %1100 = vmatpush3.bf16.msra.mxu0 %v1258_v30  ;;  %v1302_v30 = vld [vmem:[%s1606_s3 + $0x28] sm:$0xff]  }
  0x21   :  { %1128 = vmatpush3.bf16.msra.mxu1 %v1259_v31  ;;  %1141 = vmatprep.subr.bf16.mxu0 %v1260_v40  ;;  %v1303_v31 = vld [vmem:[%s1606_s3 + $0x20] sm:$0xff]  }
  0x22   :  { %1169 = vmatprep.subr.bf16.mxu1 %v1261_v41 }
  0x23   :  { %656 = vmatmul.mubr.bf16.vlgmr.msra.gmra.mxu0 %v995_v35  ;;  %v1307_v35 = vld [vmem:[%s1606_s3] sm:$0xff]  }
  0x24   :  { %704 = vmatmul.mubr.bf16.vlgmr.msra.gmra.mxu1 %v997_v38  ;;  %1142 = vmatpush3.bf16.msra.mxu0 %v1262_v42 }
  0x25   :  { %1170 = vmatpush3.bf16.msra.mxu1 %v1263_v43  ;;  %1143 = vmatprep.subr.bf16.mxu0 %v1264_v44 }
  0x26   :  { %1171 = vmatprep.subr.bf16.mxu1 %v1265_v45  ;;  %663 = vmatprep.mubr.bf16.mxu0 %v1004_v59 }
  0x27   :  { %711 = vmatprep.mubr.bf16.mxu1 %v1006_v0 }
  0x28   :  { %1144 = vmatpush3.bf16.msra.mxu0 %v1266_v46 }
  0x29   :  { %1172 = vmatpush3.bf16.msra.mxu1 %v1267_v47  ;;  %1145 = vmatprep.subr.bf16.mxu0 %v1268_v48 }
  0x2a   :  { %1173 = vmatprep.subr.bf16.mxu1 %v1269_v49 }
  0x2b   :  { %664 = vmatmul.mubr.bf16.gmra.mxu0 %v1003_v61 }
  0x2c   :  { %1146 = vmatpush3.bf16.msra.mxu0 %v1270_v50  ;;  %712 = vmatmul.mubr.bf16.gmra.mxu1 %v1005_v1 }
  0x2d   :  { %1174 = vmatpush3.bf16.msra.mxu1 %v1271_v51  ;;  %1147 = vmatprep.subr.bf16.mxu0 %v1272_v52 }
  0x2e   :  { %1175 = vmatprep.subr.bf16.mxu1 %v1273_v53  ;;  %751 = vmatprep.mubr.bf16.mxu0 %v1000_v18 }
  0x2f   :  { %799 = vmatprep.mubr.bf16.mxu1 %v1002_v23 }
  0x30   :  { %1148 = vmatpush3.bf16.msra.mxu0 %v1274_v54 }
  0x31   :  { %1176 = vmatpush3.bf16.msra.mxu1 %v1275_v55  ;;  %1149 = vmatprep.subr.bf16.mxu0 %v1276_v56 }
  0x32   :  { %1177 = vmatprep.subr.bf16.mxu1 %v1277_v57 }
  0x34   :  { %1150 = vmatpush3.bf16.msra.mxu0 %v1279_v60 }
  0x35   :  { %1178 = vmatpush3.bf16.msra.mxu1 %v1280_v62  ;;  %1151 = vmatprep.subr.bf16.mxu0 %v1284_v2 }
  0x36   :  { %1179 = vmatprep.subr.bf16.mxu1 %v1285_v3 }
  0x38   :  { %1152 = vmatpush3.bf16.msra.mxu0 %v1286_v4 }
  0x39   :  { %1180 = vmatpush3.bf16.msra.mxu1 %v1287_v5  ;;  %1153 = vmatprep.subr.bf16.mxu0 %v1288_v6 }
  0x3a   :  { %1181 = vmatprep.subr.bf16.mxu1 %v1289_v7 }
  0x3c   :  { %1154 = vmatpush3.bf16.msra.mxu0 %v1290_v8 }
  0x3d   :  { %1182 = vmatpush3.bf16.msra.mxu1 %v1291_v9  ;;  %1155 = vmatprep.subr.bf16.mxu0 %v1292_v10  ;;  %v1075_v9 = vld [vmem:[%s1607_s2] ss:$0 sm:$0xff] }
  0x3e   :  { %1183 = vmatprep.subr.bf16.mxu1 %v1293_v11 }
  0x40   :  { %1156 = vmatpush3.bf16.msra.mxu0 %v1294_v12 }
  0x41   :  { %1184 = vmatpush3.bf16.msra.mxu1 %v1295_v13  ;;  %1207 = vmatprep.subr.bf16.mxu0 %v1300_v28 }
  0x43   :  { %752 = vmatmul.mubr.bf16.vlgmr.msra.gmra.mxu0 %v999_v17 }
  0x44   :  { %800 = vmatmul.mubr.bf16.vlgmr.msra.gmra.mxu1 %v1001_v22  ;;  %759 = vmatprep.mubr.bf16.mxu0 %v1008_v24 }
  0x45   :  { %807 = vmatprep.mubr.bf16.mxu1 %v1010_v25  ;;  %1208 = vmatpush3.bf16.msra.mxu0 %v1300_v28 }
  0x46   :  { %1209 = vmatprep.subr.bf16.mxu0 %v1301_v29 }
  0x49   :  { %1210 = vmatpush3.bf16.msra.mxu0 %v1301_v29 }
  0x4a   :  { %1211 = vmatprep.subr.bf16.mxu0 %v1302_v30 }
  0x4b   :  { %760 = vmatmul.mubr.bf16.gmra.mxu0 %v1007_v26 }
  0x4c   :  { %808 = vmatmul.mubr.bf16.gmra.mxu1 %v1009_v27 }
  0x4d   :  { %1212 = vmatpush3.bf16.msra.mxu0 %v1302_v30 }
  0x4e   :  { %1213 = vmatprep.subr.bf16.mxu0 %v1303_v31 }
  0x51   :  { %1214 = vmatpush3.bf16.msra.mxu0 %v1303_v31 }
  0x52   :  { %1215 = vmatprep.subr.bf16.mxu0 %v1304_v32 }
  0x55   :  { %1216 = vmatpush3.bf16.msra.mxu0 %v1304_v32 }
  0x56   :  { %1217 = vmatprep.subr.bf16.mxu0 %v1305_v33 }
  0x59   :  { %1218 = vmatpush3.bf16.msra.mxu0 %v1305_v33 }
  0x5a   :  { %1219 = vmatprep.subr.bf16.mxu0 %v1306_v34 }
  0x5d   :  { %1220 = vmatpush3.bf16.msra.mxu0 %v1306_v34  ;;  %v961_v34 = vlaneseq }
  0x5e   :  { %1221 = vmatprep.subr.bf16.mxu0 %v1307_v35 }
  0x61   :  { %1222 = vmatpush3.bf16.msra.mxu0 %v1307_v35 }
  0xe3   :  { %v1101_v36 = vpop.f32.mrf.mxu0 }
  0xe4   :  { %v1129_v37 = vpop.f32.mrf.mxu1 }
  0xe5   :  { %v1102_v38 = vpop.f32.mrf.mxu0 }
  0xe6   :  { %v1130_v39 = vpop.f32.mrf.mxu1  ;;  %v1103_v52 = vadd.f32 %v1102_v38, %v1101_v36  ;;  %v1076_v38 = vld [vmem:[%s1608_s4] ss:$0 sm:$0xff] }
  0xe7   :  { %v1104_v40 = vpop.f32.mrf.mxu0  ;;  %v1131_v53 = vadd.f32 %v1130_v39, %v1129_v37  ;;  %v962_v37 = vand.u32 127, %v961_v34 }
  0xe8   :  { %v1132_v41 = vpop.f32.mrf.mxu1 }
  0xe9   :  { %v1105_v42 = vpop.f32.mrf.mxu0  ;;  %v706_v59 = vadd.f32 %v1131_v53, %v1103_v52  ;;  %vm963_vm0 = vcmp.lt.s32.totalorder %v962_v37, 32 }
  0xea   :  { %v1133_v43 = vpop.f32.mrf.mxu1  ;;  %v1106_v56 = vadd.f32 %v1105_v42, %v1104_v40 }
  0xeb   :  { %v1107_v44 = vpop.f32.mrf.mxu0  ;;  %v1134_v57 = vadd.f32 %v1133_v43, %v1132_v41 }
  0xec   :  { %v1135_v46 = vpop.f32.mrf.mxu1 }
  0xed   :  { %v1108_v45 = vpop.f32.mrf.mxu0  ;;  %v709_v2 = vadd.f32 %v1134_v57, %v1106_v56 }
  0xee   :  { %v1136_v48 = vpop.f32.mrf.mxu1  ;;  %v1109_v4 = vadd.f32 %v1108_v45, %v1107_v44 }
  0xef   :  { %v1110_v47 = vpop.f32.mrf.mxu0  ;;  %v1137_v5 = vadd.f32 %v1136_v48, %v1135_v46  ;;  %v1312_v46 = vmov 0.0  }
  0xf0   :  { %v1138_v50 = vpop.f32.mrf.mxu1  ;;  %v964_v47 = vsel %vm963_vm0, 1e-06, %v1312_v46 }
  0xf1   :  { %v1111_v49 = vpop.f32.mrf.mxu0  ;;  %v714_v15 = vadd.f32 %v1137_v5, %v1109_v4 }
  0xf2   :  { %v1139_v51 = vpop.f32.mrf.mxu1 }
 0x103   :  { %v1157_v54 = vpop.f32.mrf.mxu0 }
 0x104   :  { %v1185_v55 = vpop.f32.mrf.mxu1 }
 0x105   :  { %v1158_v58 = vpop.f32.mrf.mxu0 }
 0x106   :  { %v1159_v60 = vadd.f32 %v1158_v58, %v1157_v54  ;;  %v1186_v61 = vpop.f32.mrf.mxu1 }
 0x107   :  { %v1160_v62 = vpop.f32.mrf.mxu0  ;;  %v1187_v0 = vadd.f32 %v1186_v61, %v1185_v55 }
 0x108   :  { %v754_v63 = vadd.f32 %v1159_v60, %v706_v59  ;;  %v1188_v1 = vpop.f32.mrf.mxu1 }
 0x109   :  { %v1161_v3 = vpop.f32.mrf.mxu0 }
 0x10a   :  { %v802_v6 = vadd.f32 %v1187_v0, %v754_v63  ;;  %v1162_v7 = vadd.f32 %v1161_v3, %v1160_v62  ;;  %v1189_v8 = vpop.f32.mrf.mxu1 }
 0x10b   :  { %v1163_v10 = vpop.f32.mrf.mxu0  ;;  %v1190_v12 = vadd.f32 %v1189_v8, %v1188_v1 }
 0x10c   :  { %v757_v11 = vadd.f32 %v1162_v7, %v709_v2  ;;  %v1191_v13 = vpop.f32.mrf.mxu1  ;;  %v834_v16 = vadd.f32 %v1075_v9, %v802_v6 }
 0x10d   :  { %v1164_v14 = vpop.f32.mrf.mxu0 }
 0x10e   :  { %v805_v17 = vadd.f32 %v1190_v12, %v757_v11  ;;  %v1165_v18 = vadd.f32 %v1164_v14, %v1163_v10  ;;  %v1192_v19 = vpop.f32.mrf.mxu1  ;;  %v837_v26 = vmax.f32 %v834_v16, 0.0 }
 0x10f   :  { %v1166_v20 = vpop.f32.mrf.mxu0  ;;  %v1193_v23 = vadd.f32 %v1192_v19, %v1191_v13 }
 0x110   :  { %v835_v21 = vadd.f32 %v1075_v9, %v805_v17  ;;  %v762_v22 = vadd.f32 %v1165_v18, %v714_v15  ;;  %v1194_v24 = vpop.f32.mrf.mxu1 }
 0x111   :  { %v1167_v25 = vpop.f32.mrf.mxu0 }
 0x112   :  { %v838_v27 = vmax.f32 %v835_v21, 0.0  ;;  %v810_v28 = vadd.f32 %v1193_v23, %v762_v22  ;;  %v1195_v29 = vpop.f32.mrf.mxu1 }
 0x114   :  { %v836_v30 = vadd.f32 %v1075_v9, %v810_v28  ;;  %v840_v31 = vpack.c.bf16 %v838_v27, %v837_v26 }
 0x116   :  { %v839_v32 = vmax.f32 %v836_v30, 0.0  ;;  %1223 = vmatprep.mubr.bf16.mxu0 %v840_v31 }
 0x118   :  { %v841_v33 = vpack.c.bf16 %v839_v32, %v839_v32 }
 0x11a   :  { %1224 = vmatmul.mubr.bf16.vlgmr.msra.gmra.mxu0 %v841_v33 }
 0x1da   :  { %v1225_v35 = vpop.f32.mrf.mxu0 }
 0x1db   :  { %v956_v42 = vadd.f32 %v1225_v35, %v1076_v38 }
 0x1dc   :  { %v947_v36 = vpop.f32.mrf.mxu0 }
 0x1dd   :  { %v948_v40 = vadd.f32 %v1076_v38, %v947_v36 }
 0x1de   :  { %v1226_v39 = vpop.f32.mrf.mxu0 }
 0x1df   :  { %v977_v44 = vsub.f32 %v948_v40, %v956_v42 }
 0x1e0   :  { %v950_v41 = vpop.f32.mrf.mxu0 }
 0x1e1   :  { %v951_v43 = vadd.f32 %v1076_v38, %v950_v41  ;;  %v978_v50 = vadd.f32 %v977_v44, %v964_v47 }
 0x1e3   :  { %v965_v45 = vsub.f32 %v948_v40, %v951_v43  ;;  %v979_v51 = vmul.f32 %v978_v50, %v978_v50 }
 0x1e5   :  { %v966_v48 = vadd.f32 %v965_v45, %v964_v47 }
 0x1e7   :  { %v967_v49 = vmul.f32 %v966_v48, %v966_v48 }
 0x1e9   :  { %968 = vadd.xlane.f32.xlu0 %v967_v49 }
 0x1ed   :  { %980 = vadd.xlane.f32.xlu0 %v979_v51 }
 0x272   :  { %v969_v52 = vpop.xlane.xlu0 %968 }
 0x273   :  { %1308 = vrsqrt.f32 %v969_v52  ;;  %vm972_vm1 = vcmp.eq.f32.partialorder %v969_v52, inf  ;;  %v975_v59 = vand.u32 2147483648, %v969_v52  ;;  %vm974_vm3 = vcmp.eq.f32.partialorder %v969_v52, 0.0 }
 0x276   :  { %v981_v53 = vpop.xlane.xlu0 %980 }
 0x277   :  { %1310 = vrsqrt.f32 %v981_v53  ;;  %vm984_vm2 = vcmp.eq.f32.partialorder %v981_v53, inf  ;;  %v987_v60 = vand.u32 2147483648, %v981_v53  ;;  %vm986_vm4 = vcmp.eq.f32.partialorder %v981_v53, 0.0 }
 0x280   :  { %v1309_v54 = vpop.eup %1308 }
 0x281   :  { %v971_v55 = vmul.f32 %v1309_v54, %v969_v52 }
 0x283   :  { %v973_v57 = vsel %vm972_vm1, %v969_v52, %v971_v55 }
 0x284   :  { %v1311_v56 = vpop.eup %1310  ;;  %v976_v62 = vsel %vm974_vm3, %v975_v59, %v973_v57 }
 0x285   :  { %v983_v58 = vmul.f32 %v1311_v56, %v981_v53 }
 0x287   :  { %v985_v61 = vsel %vm984_vm2, %v981_v53, %v983_v58 }
 0x288   :  { %v988_v63 = vsel %vm986_vm4, %v987_v60, %v985_v61 }
 0x289   :  { %v989_v0 = vsub.f32 %v976_v62, %v988_v63 }
 0x28b   :  { %990 = vst [vmem:[%s1609_s5] sm:$0xff] %v989_v0 }

</bundles_post_ra>
